<compile_context>
chip_gen: v7x
topology: tpu7x:2x2x1
jax: 0.10.0
libtpu: 0.0.40
codegen_flags: <defaults>
</compile_context>

<pallas_src>
import jax
import jax.numpy as jnp
from jax import lax
from jax.experimental import pallas as pl
from jax.experimental.pallas import tpu as pltpu

_LOG2E = 1.4426950408889634
_MASK = -1e30                      # finite mask value (NaN-safe)
_VMEM_LIMIT = 32 * 1024 * 1024     # v7x-safe (64 MiB physical VMEM)


# ---------------------------------------------------------------------------
# Kernel 1: fused K/Q/V projection  (rows tile, C) @ (C, 3H) -> 3 x (rows, H)
# ---------------------------------------------------------------------------
def kqv_proj_kernel(x_ref, w_ref, k_ref, q_ref, v_ref):
    H = k_ref.shape[-1]
    # One wide MXU pass; split the (rows, 3H) result into three outputs in VMEM
    # so the wrapper never re-slices the projected tensor from HBM.
    kqv = jnp.dot(x_ref[...], w_ref[...], preferred_element_type=jnp.float32)
    k_ref[...] = kqv[:, 0:H].astype(k_ref.dtype)
    q_ref[...] = kqv[:, H:2 * H].astype(q_ref.dtype)
    v_ref[...] = kqv[:, 2 * H:3 * H].astype(v_ref.dtype)


# ---------------------------------------------------------------------------
# Kernel 2: causal flash attention (single head), online softmax over KV tiles
# ---------------------------------------------------------------------------
def flash_attn_kernel(q_ref, k_ref, v_ref, o_ref, m_sc, l_sc, acc_sc):
    # q_ref: (TQ, H)  k_ref/v_ref: (TKV, H)  o_ref: (TQ, H)   (flattened rows)
    qi = pl.program_id(1)
    ki = pl.program_id(2)
    TQ, _ = q_ref.shape
    TKV = k_ref.shape[0]

    @pl.when(ki == 0)
    def _init():
        m_sc[...] = jnp.full_like(m_sc, _MASK)
        l_sc[...] = jnp.zeros_like(l_sc)
        acc_sc[...] = jnp.zeros_like(acc_sc)

    # TQ == TKV, so KV tiles strictly above the diagonal satisfy ki > qi.
    # Their DMAs are already elided via the clamped index_map; skip the math.
    @pl.when(ki <= qi)
    def _compute():
        q = q_ref[...]                       # native (bf16) dtype into the MXU
        k = k_ref[...]
        # q @ k^T by contracting the last axes of both (no transpose copy).
        # Scores are already in log2 units (log2(e)/sqrt(C) folded into Wq).
        s = lax.dot_general(
            q, k, (((1,), (1,)), ((), ())), preferred_element_type=jnp.float32
        )                                    # (TQ, TKV) f32

        row = qi * TQ + lax.broadcasted_iota(jnp.int32, (TQ, TKV), 0)
        col = ki * TKV + lax.broadcasted_iota(jnp.int32, (TQ, TKV), 1)
        s = jnp.where(col <= row, s, _MASK)

        m_prev = m_sc[...]
        m_new = jnp.maximum(m_prev, jnp.max(s, axis=-1, keepdims=True))
        alpha = jnp.exp2(m_prev - m_new)     # exp2: multiply pre-folded away
        p = jnp.exp2(s - m_new)
        l_sc[...] = alpha * l_sc[...] + jnp.sum(p, axis=-1, keepdims=True)
        acc_sc[...] = alpha * acc_sc[...] + jnp.dot(
            p.astype(v_ref.dtype), v_ref[...], preferred_element_type=jnp.float32
        )
        m_sc[...] = m_new

    @pl.when(ki == pl.num_programs(2) - 1)
    def _finalize():
        # Safe: causal attention guarantees >=1 unmasked key per query row.
        inv_l = pl.reciprocal(l_sc[...], approx=True)   # EUP slot, ~free
        o_ref[...] = (acc_sc[...] * inv_l).astype(o_ref.dtype)


# ---------------------------------------------------------------------------
# Wrapper
# ---------------------------------------------------------------------------
def _device_kind():
    try:
        return jax.devices()[0].device_kind.lower()
    except Exception:
        return ""


def _pick_row_tile(n_rows, target=512):
    """Largest row tile <= target that divides n_rows (streaming projection)."""
    if n_rows <= target:
        return n_rows
    for cand in (target, 256, 128, 64, 32, 16, 8):
        if n_rows % cand == 0:
            return cand
    return n_rows


def head_forward(x, w_key, w_query, w_value, *, time_tile=None, matmul_dtype=None):
    """x: (B, T, C); w_*: (H, C) in PyTorch nn.Linear layout (out, in)."""
    B, T, C = x.shape
    H = w_key.shape[0]

    kind = _device_kind()
    newer_gen = ("v6" in kind) or ("v7" in kind) or ("7x" in kind)
    if time_tile is None:
        time_tile = 256 if newer_gen else 128          # v6e/v7x: 256-wide MXU
    if matmul_dtype is None:
        # f32 models: bf16 MXU operands (full rate on all generations, half the
        # K/Q/V HBM bytes); softmax stats & accumulation remain f32.
        matmul_dtype = jnp.bfloat16 if x.dtype == jnp.float32 else x.dtype

    # Module score scale is 1/sqrt(C) (num_embeddings, matching the PyTorch
    # code); log2(e) folded in so the online softmax uses exp2 directly.
    scale = _LOG2E / (C ** 0.5)
    w_kqv = jnp.concatenate(
        [w_key.T, w_query.T * scale, w_value.T], axis=1
    ).astype(x.dtype)                                    # (C, 3H)

    rows = B * T
    x_flat = x.reshape(rows, C)                          # free (contiguous)

    # --- Kernel 1: fused projection over flat row tiles ---------------------
    ROWS = _pick_row_tile(rows)
    proj_out = jax.ShapeDtypeStruct((rows, H), matmul_dtype)
    k, q, v = pl.pallas_call(
        kqv_proj_kernel,
        out_shape=(proj_out, proj_out, proj_out),
        grid_spec=pltpu.PrefetchScalarGridSpec(
            num_scalar_prefetch=0,
            grid=(rows // ROWS,),
            in_specs=[
                pl.BlockSpec((ROWS, C), lambda i: (i, 0)),
                pl.BlockSpec((C, 3 * H), lambda i: (0, 0)),   # weight resident
            ],
            out_specs=[
                pl.BlockSpec((ROWS, H), lambda i: (i, 0)),
                pl.BlockSpec((ROWS, H), lambda i: (i, 0)),
                pl.BlockSpec((ROWS, H), lambda i: (i, 0)),
            ],
        ),
        compiler_params=pltpu.CompilerParams(
            dimension_semantics=("parallel",),
            vmem_limit_bytes=_VMEM_LIMIT,
        ),
    )(x_flat, w_kqv)

    # --- Kernel 2: causal flash attention ------------------------------------
    TT = T if T <= time_tile else time_tile
    assert T % TT == 0, "T must be a multiple of the time tile"
    assert TT % 8 == 0 or (B == 1 and TT == T), "time tile must be sublane aligned"
    TQ = TKV = TT
    nq = T // TQ
    nkv = T // TKV

    q_map = lambda b, qi, ki: (b * nq + qi, 0)
    # Clamp to the causal range: above-diagonal steps re-request the previous
    # block -> Pallas elides the DMA (dead K/V fetches removed).
    kv_map = lambda b, qi, ki: (b * nkv + jnp.minimum(ki, qi), 0)

    out_flat = pl.pallas_call(
        flash_attn_kernel,
        out_shape=jax.ShapeDtypeStruct((rows, H), x.dtype),
        grid_spec=pltpu.PrefetchScalarGridSpec(
            num_scalar_prefetch=0,
            grid=(B, nq, nkv),
            in_specs=[
                pl.BlockSpec((TQ, H), q_map),
                pl.BlockSpec((TKV, H), kv_map),
                pl.BlockSpec((TKV, H), kv_map),
            ],
            out_specs=pl.BlockSpec((TQ, H), q_map),
            scratch_shapes=[
                pltpu.VMEM((TQ, 1), jnp.float32),   # running max m (log2 units)
                pltpu.VMEM((TQ, 1), jnp.float32),   # running denom l
                pltpu.VMEM((TQ, H), jnp.float32),   # output accumulator
            ],
        ),
        compiler_params=pltpu.CompilerParams(
            dimension_semantics=("parallel", "parallel", "arbitrary"),
            vmem_limit_bytes=_VMEM_LIMIT,
        ),
    )(q, k, v)

    return out_flat.reshape(B, T, H)


def reference_forward(x, w_key, w_query, w_value):
    """Pure-JAX reference mirroring the PyTorch forward (eval mode)."""
    B, T, C = x.shape
    k = x @ w_key.T
    q = x @ w_query.T
    v = x @ w_value.T
    weights = (q @ jnp.swapaxes(k, -2, -1)) / (C ** 0.5)
    tril = jnp.tril(jnp.ones((T, T)))
    weights = jnp.where(tril == 0, -jnp.inf, weights)
    weights = jax.nn.softmax(weights, axis=-1)
    return weights @ v


if __name__ == "__main__":
    # Small shapes consistent with the module.
    B, T, C, H = 2, 8, 32, 16          # batch, context_len, num_embeddings, head_size

    key = jax.random.PRNGKey(0)
    kx, kk, kq, kv = jax.random.split(key, 4)

    x = jax.random.normal(kx, (B, T, C), dtype=jnp.float32)
    # nn.Linear weight shape: (out_features, in_features); deterministic init.
    init_scale = 1.0 / jnp.sqrt(jnp.float32(C))
    w_key = jax.random.uniform(kk, (H, C), minval=-init_scale, maxval=init_scale,
                               dtype=jnp.float32)
    w_query = jax.random.uniform(kq, (H, C), minval=-init_scale, maxval=init_scale,
                                 dtype=jnp.float32)
    w_value = jax.random.uniform(kv, (H, C), minval=-init_scale, maxval=init_scale,
                                 dtype=jnp.float32)

    out = head_forward(x, w_key, w_query, w_value)
    out = jax.block_until_ready(out)

    ref = reference_forward(x, w_key, w_query, w_value)
    assert out.shape == (B, T, H), out.shape
    # bf16 K/Q/V + bf16 PV operands and an approx EUP reciprocal in the softmax
    # normalization -> compare against the f32 reference with loosened tolerance.
    assert jnp.allclose(out, ref, atol=2e-2, rtol=2e-2), "mismatch vs reference"

    print("KERNEL_OK")
</pallas_src>

<mosaic_0001>
module attributes {stable_mosaic.version = 11 : i64} {
  func.func @kqv_proj_kernel(%arg0: i32, %arg1: memref<16x32xf32, #tpu.memory_space<vmem>>, %arg2: memref<32x48xf32, #tpu.memory_space<vmem>>, %arg3: memref<16x16xbf16, #tpu.memory_space<vmem>>, %arg4: memref<16x16xbf16, #tpu.memory_space<vmem>>, %arg5: memref<16x16xbf16, #tpu.memory_space<vmem>>) attributes {dimension_semantics = [#tpu.dimension_semantics<parallel>], iteration_bounds = array<i64: 1>, scalar_prefetch = 0 : i64, scratch_operands = 0 : i64, tpu.core_type = #tpu.core_type<tc>, window_params = [{transform_indices = @transform_0, window_bounds = array<i64: 16, 32>}, {pipeline_mode = #tpu.pipeline_mode<synchronous>, transform_indices = @transform_1, window_bounds = array<i64: 32, 48>}, {transform_indices = @transform_2, window_bounds = array<i64: 16, 16>}, {transform_indices = @transform_3, window_bounds = array<i64: 16, 16>}, {transform_indices = @transform_4, window_bounds = array<i64: 16, 16>}]} {
    %c0 = arith.constant 0 : index
    %c0_0 = arith.constant 0 : index
    %0 = vector.load %arg1[%c0, %c0_0] : memref<16x32xf32, #tpu.memory_space<vmem>>, vector<16x32xf32>
    %c0_1 = arith.constant 0 : index
    %c0_2 = arith.constant 0 : index
    %1 = vector.load %arg2[%c0_1, %c0_2] : memref<32x48xf32, #tpu.memory_space<vmem>>, vector<32x48xf32>
    %cst = arith.constant dense<0.000000e+00> : vector<16x48xf32>
    %2 = tpu.matmul %0, %1, %cst {dimension_numbers = #tpu.dot_dimension_numbers<[1], [0], [0], [1], [0, 0, 1, 1], [], []>} : vector<16x32xf32>, vector<32x48xf32>, vector<16x48xf32> -> vector<16x48xf32>
    %3 = vector.extract_strided_slice %2 {offsets = [0, 0], sizes = [16, 16], strides = [1, 1]} : vector<16x48xf32> to vector<16x16xf32>
    %4 = arith.truncf %3 : vector<16x16xf32> to vector<16x16xbf16>
    %c0_3 = arith.constant 0 : index
    %c0_4 = arith.constant 0 : index
    %5 = vector.load %arg3[%c0_3, %c0_4] : memref<16x16xbf16, #tpu.memory_space<vmem>>, vector<16x16xbf16>
    tpu.vector_store %arg3[%c0_3, %c0_4], %4 {strides = array<i32>} : memref<16x16xbf16, #tpu.memory_space<vmem>>, vector<16x16xbf16>,
    %6 = vector.extract_strided_slice %2 {offsets = [0, 16], sizes = [16, 16], strides = [1, 1]} : vector<16x48xf32> to vector<16x16xf32>
    %7 = arith.truncf %6 : vector<16x16xf32> to vector<16x16xbf16>
    %c0_5 = arith.constant 0 : index
    %c0_6 = arith.constant 0 : index
    %8 = vector.load %arg4[%c0_5, %c0_6] : memref<16x16xbf16, #tpu.memory_space<vmem>>, vector<16x16xbf16>
    tpu.vector_store %arg4[%c0_5, %c0_6], %7 {strides = array<i32>} : memref<16x16xbf16, #tpu.memory_space<vmem>>, vector<16x16xbf16>,
    %9 = vector.extract_strided_slice %2 {offsets = [0, 32], sizes = [16, 16], strides = [1, 1]} : vector<16x48xf32> to vector<16x16xf32>
    %10 = arith.truncf %9 : vector<16x16xf32> to vector<16x16xbf16>
    %c0_7 = arith.constant 0 : index
    %c0_8 = arith.constant 0 : index
    %11 = vector.load %arg5[%c0_7, %c0_8] : memref<16x16xbf16, #tpu.memory_space<vmem>>, vector<16x16xbf16>
    tpu.vector_store %arg5[%c0_7, %c0_8], %10 {strides = array<i32>} : memref<16x16xbf16, #tpu.memory_space<vmem>>, vector<16x16xbf16>,
    return
  }
  func.func @transform_0(%arg0: i32) -> (i32, i32) {
    %c0_i32 = arith.constant 0 : i32
    %c0_i32_0 = arith.constant 0 : i32
    return %arg0, %c0_i32 : i32, i32
  }
  func.func @transform_1(%arg0: i32) -> (i32, i32) {
    %c0_i32 = arith.constant 0 : i32
    %c0_i32_0 = arith.constant 0 : i32
    %c0_i32_1 = arith.constant 0 : i32
    return %c0_i32, %c0_i32_0 : i32, i32
  }
  func.func @transform_2(%arg0: i32) -> (i32, i32) {
    %c0_i32 = arith.constant 0 : i32
    %c0_i32_0 = arith.constant 0 : i32
    return %arg0, %c0_i32 : i32, i32
  }
  func.func @transform_3(%arg0: i32) -> (i32, i32) {
    %c0_i32 = arith.constant 0 : i32
    %c0_i32_0 = arith.constant 0 : i32
    return %arg0, %c0_i32 : i32, i32
  }
  func.func @transform_4(%arg0: i32) -> (i32, i32) {
    %c0_i32 = arith.constant 0 : i32
    %c0_i32_0 = arith.constant 0 : i32
    return %arg0, %c0_i32 : i32, i32
  }
}

</mosaic_0001>

<bundles_post_ra>
// kernel: tpu_custom_call.1
= control target key start
LH: loop header
LB: loop body
LE: loop exit
PB: predicated region body
PF: predicated region fallthrough
CT: control target
= control target key end

     0   :  { %10 = vsyncpa [#allocation3], 0  ;;  %s486_s0 = inlined_call_operand.hbm [shape: f32[16,32], index: 0, kind: input, shape index: {}]   ;;  %s487_s1 = inlined_call_operand.hbm [shape: f32[32,48], index: 1, kind: input, shape index: {}]   ;;  %s488_s2 = inlined_call_operand.hbm [shape: bf16[16,16], index: 2, kind: output, shape index: {0}]   ;;  %s489_s3 = inlined_call_operand.hbm [shape: bf16[16,16], index: 3, kind: output, shape index: {1}]   ;;  %s490_s4 = inlined_call_operand.hbm [shape: bf16[16,16], index: 4, kind: output, shape index: {2}]  }
   0x1   :  { %11 = vsyncpa [#allocation6], 0 }
   0x2   :  { %12 = vsyncpa [#allocation4], 0 }
   0x3   :  { %13 = vsyncpa [#allocation9], 0  ;;  %s368_s15 = smov [#allocation2]   ;;  %s250_s19 = scalar_lea.hbm %s486_s0, 256 }
   0x4   :  { %s19_s16 = sshll.u32 %s368_s15, 4  ;;  %p251_p0 = scmp.ne.s32.totalorder %s486_s0, %s250_s19  ;;  %s20_s16 = int_to_ptr.vmem [resolvable:$true] %s19_s16 }
   0x5   :  { %p254_p1 = scmp.lt.u32.totalorder %s250_s19, %s486_s0 }
   0x7   :  { %p256_p2 = pnand %p254_p1, %p251_p0 }
   0x9   :  { %259 = shalt.err (!%p256_p2)
}
   0xa   :  { %s260_s24 = scalar_lea.vmem %s20_s16, 256  ;;  %p265_p4 = scmp.lt.s32.totalorder %s20_s16, %s20_s16 }
   0xb   :  { %p261_p3 = scmp.ne.s32.totalorder %s20_s16, %s260_s24  ;;  %p266_p5 = scmp.lt.s32.totalorder %s260_s24, %s260_s24 }
   0xd   :  { %p267_p6 = por %p266_p5, %p265_p4 }
   0xf   :  { %p268_p7 = pnand %p267_p6, %p261_p3 }
  0x11   :  { %271 = shalt.err (!%p268_p7)
}
  0x12   :  { %s369_s25 = smov 128   ;;  %s370_s26 = smov 8  }
  0x13   :  { %25 = dma.hbm_to_vmem [thread:$0]  %s486_s0, 256, %s20_s16, [#allocation3], %s369_s25, %s369_s25, %s370_s26  }
  0x14   :  { %s371_s29 = smov [#allocation5]   ;;  %s272_s7 = scalar_lea.hbm %s487_s1, 512 }
  0x15   :  { %s31_s30 = sshll.u32 %s371_s29, 4  ;;  %p273_p8 = scmp.ne.s32.totalorder %s487_s1, %s272_s7  ;;  %s32_s30 = int_to_ptr.vmem [resolvable:$true] %s31_s30 }
  0x16   :  { %p276_p9 = scmp.lt.u32.totalorder %s272_s7, %s487_s1 }
  0x18   :  { %p278_p10 = pnand %p276_p9, %p273_p8 }
  0x1a   :  { %281 = shalt.err (!%p278_p10)
}
  0x1b   :  { %s282_s12 = scalar_lea.vmem %s32_s30, 512  ;;  %p287_p12 = scmp.lt.s32.totalorder %s32_s30, %s32_s30 }
  0x1c   :  { %p283_p11 = scmp.ne.s32.totalorder %s32_s30, %s282_s12  ;;  %p288_p13 = scmp.lt.s32.totalorder %s282_s12, %s282_s12 }
  0x1e   :  { %p289_p0 = por %p288_p13, %p287_p12 }
  0x20   :  { %p290_p1 = pnand %p289_p0, %p283_p11 }
  0x22   :  { %293 = shalt.err (!%p290_p1)
}
  0x23   :  { %37 = dma.hbm_to_vmem [thread:$0]  %s487_s1, 512, %s32_s30, [#allocation6], %s369_s25, %s369_s25, %s370_s26  }
  0x24   :  { %360 = dma.done.wait [#allocation3], 256  }
  0x25   :  { %361 = vsyncadd [#allocation3], 4294967040 }
  0x26   :  { %362 = dma.done.wait [#allocation6], 512  }
  0x27   :  { %363 = vsyncadd [#allocation6], 4294966784  ;;  %vm50_vm0 = vcmask 261120   ;;  %v46_v0 = vld [vmem:[#allocation5] sm:$0xff]  ;;  %v47_v1 = vld [vmem:[#allocation5 + $0x8] sm:$0xff]  ;;  %s372_s1 = smov [#allocation7]  }
  0x28   :  { %v48_v2 = vld [vmem:[#allocation5 + $0x10] sm:$0xff]  ;;  %v231_v3 = vpack.c.bf16 %v47_v1, %v46_v0  ;;  %v49_v4 = vld [vmem:[#allocation5 + $0x18] sm:$0xff]  ;;  %s164_s14 = sshll.u32 %s372_s1, 4  ;;  %vm140_vm1 = vcmask 125952   ;;  %s373_s15 = smov 96   ;;  %s165_s14 = int_to_ptr.vmem [resolvable:$true] %s164_s14 }
  0x29   :  { %v44_v5 = vld [vmem:[#allocation2] sm:$0xff]  ;;  %v235_v6 = vpack.c.bf16 %v49_v4, %v48_v2  ;;  %v45_v7 = vld [vmem:[#allocation2 + $0x8] sm:$0xff]  ;;  %s374_s16 = smov 112   ;;  %s294_s17 = scalar_lea.vmem %s165_s14, 128 }
  0x2a   :  { %228 = vmatprep.mubr.msk.f32.mxu0 %vm50_vm0, %v44_v5  ;;  %232 = vmatprep.subr.bf16.mxu0 %v231_v3  ;;  %p295_p2 = scmp.ne.s32.totalorder %s165_s14, %s294_s17  ;;  %p299_p3 = scmp.lt.s32.totalorder %s165_s14, %s165_s14 }
  0x2b   :  { %234 = vmatpush3.bf16.msra.mxu0 %v231_v3  ;;  %p300_p4 = scmp.lt.s32.totalorder %s294_s17, %s294_s17 }
  0x2c   :  { %236 = vmatprep.subr.bf16.mxu0 %v235_v6 }
  0x2d   :  { %p301_p5 = por %p300_p4, %p299_p3 }
  0x2f   :  { %238 = vmatpush3.bf16.msra.mxu0 %v235_v6  ;;  %p302_p6 = pnand %p301_p5, %p295_p2 }
  0x32   :  { %229 = vmatmul.mubr.msk.f32.vlgmr.msra.gmra.mrb[0].mxu0 %vm50_vm0, %v45_v7 }
 0x105   :  { %v230_v8 = vpop.f32.mrb[0].mxu0 }
 0x106   :  { %v213_v9 = vpack.c.bf16 %v230_v8, %v230_v8  ;;  %v123_v10 = vpop.f32.mrb[1].mxu0 }
 0x107   :  { %v212_v11 = vpack.c.bf16 %v123_v10, %v123_v10 }
 0x108   :  { %142 = vst.msk [vmem:[#allocation7 + $0x4] sm:$0xf] %vm140_vm1, %v213_v9 }
 0x109   :  { %141 = vst.msk [vmem:[#allocation7] sm:$0xf] %vm140_vm1, %v212_v11  ;;  %151 = vrot.lane.b32.xlu1 %v212_v11, %s373_s15  ;;  %143 = vrot.lane.b32.xlu0 %v212_v11, %s374_s16 }
 0x10a   :  { %305 = shalt.err (!%p302_p6)
}
 0x10b   :  { %s306_s20 = scalar_lea.hbm %s488_s2, 128 }
 0x10c   :  { %p307_p7 = scmp.ne.s32.totalorder %s488_s2, %s306_s20  ;;  %p310_p8 = scmp.lt.u32.totalorder %s306_s20, %s488_s2 }
 0x10e   :  { %p312_p9 = pnand %p310_p8, %p307_p7 }
 0x110   :  { %315 = shalt.err (!%p312_p9)
}
 0x111   :  { %s375_s25 = smov 64   ;;  %s376_s26 = smov 4   ;;  %153 = vrot.lane.b32.xlu1 %v213_v9, %s373_s15  ;;  %145 = vrot.lane.b32.xlu0 %v213_v9, %s374_s16 }
 0x112   :  { %170 = dma.vmem_to_hbm [thread:$0]  %s165_s14, 128, %s488_s2, [#allocation4], %s375_s25, %s375_s25, %s376_s26  }
 0x113   :  { %s377_s29 = smov [#allocation8]   ;;  %s378_s5 = smov [#allocation10]  }
 0x114   :  { %s176_s30 = sshll.u32 %s377_s29, 4  ;;  %s188_s6 = sshll.u32 %s378_s5, 4  ;;  %s177_s30 = int_to_ptr.vmem [resolvable:$true] %s176_s30  ;;  %s447_s6 = int_to_ptr.vmem [resolvable:$true] %s188_s6 }
 0x115   :  { %s316_s2 = scalar_lea.vmem %s177_s30, 128  ;;  %p321_p11 = scmp.lt.s32.totalorder %s177_s30, %s177_s30 }
 0x116   :  { %p317_p10 = scmp.ne.s32.totalorder %s177_s30, %s316_s2  ;;  %p322_p12 = scmp.lt.s32.totalorder %s316_s2, %s316_s2 }
 0x118   :  { %p323_p13 = por %p322_p12, %p321_p11 }
 0x11a   :  { %p324_p0 = pnand %p323_p13, %p317_p10 }
 0x17b   :  { %v152_v12 = vpop.permute.xlu1 %151  ;;  %v144_v13 = vpop.permute.xlu0 %143 }
 0x17c   :  { %157 = vst.msk [vmem:[#allocation10] sm:$0xf] %vm140_vm1, %v152_v12  ;;  %149 = vst.msk [vmem:[#allocation8] sm:$0xf] %vm140_vm1, %v144_v13 }
 0x183   :  { %v154_v14 = vpop.permute.xlu1 %153  ;;  %v146_v15 = vpop.permute.xlu0 %145 }
 0x184   :  { %158 = vst.msk [vmem:[#allocation10 + $0x4] sm:$0xf] %vm140_vm1, %v154_v14  ;;  %150 = vst.msk [vmem:[#allocation8 + $0x4] sm:$0xf] %vm140_vm1, %v146_v15 }
 0x185   :  { %327 = shalt.err (!%p324_p0)
}
 0x186   :  { %s328_s9 = scalar_lea.hbm %s489_s3, 128 }
 0x187   :  { %p329_p1 = scmp.ne.s32.totalorder %s489_s3, %s328_s9  ;;  %p332_p2 = scmp.lt.u32.totalorder %s328_s9, %s489_s3 }
 0x189   :  { %p334_p3 = pnand %p332_p2, %p329_p1 }
 0x18b   :  { %337 = shalt.err (!%p334_p3)
}
 0x18c   :  { %182 = dma.vmem_to_hbm [thread:$0]  %s177_s30, 128, %s489_s3, [#allocation9], %s375_s25, %s375_s25, %s376_s26  }
 0x18d   :  { %s338_s14 = scalar_lea.vmem %s447_s6, 128  ;;  %p343_p5 = scmp.lt.s32.totalorder %s447_s6, %s447_s6 }
 0x18e   :  { %p339_p4 = scmp.ne.s32.totalorder %s447_s6, %s338_s14  ;;  %p344_p6 = scmp.lt.s32.totalorder %s338_s14, %s338_s14 }
 0x190   :  { %p345_p7 = por %p344_p6, %p343_p5 }
 0x192   :  { %p346_p8 = pnand %p345_p7, %p339_p4 }
 0x194   :  { %349 = shalt.err (!%p346_p8)
}
 0x195   :  { %s350_s17 = scalar_lea.hbm %s490_s4, 128 }
 0x196   :  { %p351_p9 = scmp.ne.s32.totalorder %s490_s4, %s350_s17  ;;  %p354_p10 = scmp.lt.u32.totalorder %s350_s17, %s490_s4 }
 0x198   :  { %p356_p11 = pnand %p354_p10, %p351_p9 }
 0x19a   :  { %359 = shalt.err (!%p356_p11)
}
 0x19b   :  { %194 = dma.vmem_to_hbm [thread:$0]  %s447_s6, 128, %s490_s4, [#allocation9], %s375_s25, %s375_s25, %s376_s26  }
 0x19c   :  { %364 = dma.done.wait [#allocation4], 128  }
 0x19d   :  { %365 = vsyncadd [#allocation4], 4294967168 }
 0x19e   :  { %366 = dma.done.wait [#allocation9], 256  }
 0x19f   :  { %367 = vsyncadd [#allocation9], 4294967040 }
 0x1a0   :  { %204 = vsyncpa [#allocation3], 1 }
 0x1a1   :  { %205 = vsyncpa [#allocation6], 1 }
 0x1a2   :  { %206 = vsyncpa [#allocation4], 1 }
 0x1a3   :  { %207 = vsyncpa [#allocation9], 1 }

</bundles_post_ra>
